<compile_context>
chip_gen: v5e
topology: v5e:2x2
jax: 0.10.0
libtpu: 0.0.40
codegen_flags: <defaults>
</compile_context>

<pallas_src>
import functools

import jax
import jax.numpy as jnp
from jax.experimental import pallas as pl
from jax.experimental.pallas import tpu as pltpu


def _round_up(a, m):
    return ((a + m - 1) // m) * m


def _generator_kernel(x_ref,
                      w0_ref, b0_ref,
                      w1_ref, b1_ref,
                      we_ref, be_ref,
                      wn_ref, bn_ref,
                      edges_ref, nodes_ref):
    """Fused MLP (Linear->Tanh stack) + edges/nodes heads.

    x_ref:           (TB, z_dim)     batch tile
    w*/b*:           full weight/bias tiles, resident across grid iterations
    edges_ref:       (TB, E*V*V)     edges-head output slab (V,V,E column order)
    nodes_ref:       (TB, V*N)       nodes-head output slab
    """
    x = x_ref[...].astype(jnp.float32)

    # layer 0: Linear + Tanh   (dropout == identity in eval mode)
    h = jnp.tanh(
        jnp.dot(x, w0_ref[...], preferred_element_type=jnp.float32)
        + b0_ref[...]
    )
    # layer 1: Linear + Tanh   (dropout == identity in eval mode)
    h = jnp.tanh(
        jnp.dot(h, w1_ref[...], preferred_element_type=jnp.float32)
        + b1_ref[...]
    )

    # edges head (symmetrize + permute already folded into we/be columns)
    edges_ref[...] = (
        jnp.dot(h, we_ref[...], preferred_element_type=jnp.float32)
        + be_ref[...]
    )
    # nodes head
    nodes_ref[...] = (
        jnp.dot(h, wn_ref[...], preferred_element_type=jnp.float32)
        + bn_ref[...]
    )


def prepare_params(params, *, vertexes, edges, nodes):
    """One-time param transform (algebraically exact):

    Fold the (e + e^T)/2 symmetrization and the (0,1,3,2)->(0,2,3,1) permute
    into the edges-head weight/bias columns, so the kernel's edges output
    already has (V, V, E) column order and the wrapper only reshapes.
    """
    (w0, b0, w1, b1, we, be, wn, bn) = params
    V, E = vertexes, edges
    c1 = w1.shape[1]
    evv = E * V * V

    we_r = we.reshape(c1, E, V, V)
    we_f = jnp.transpose((we_r + jnp.swapaxes(we_r, 2, 3)) * 0.5,
                         (0, 2, 3, 1)).reshape(c1, evv)
    be_r = be.reshape(1, E, V, V)
    be_f = jnp.transpose((be_r + jnp.swapaxes(be_r, 2, 3)) * 0.5,
                         (0, 2, 3, 1)).reshape(1, evv)

    return (w0, b0, w1, b1, we_f, be_f, wn, bn)


def _select_batch_tiling(B, row_bytes, *, tb_max=2048, vmem_budget=12 << 20):
    """Pick (TB, nb, B_pad).

    - TB is a multiple of 8, capped at tb_max and by a double-buffer VMEM
      budget sized for v5e's 16 MiB scoped default (the binding generation).
    - nb >= 2 whenever there are >= 16 rows, so v7x's two TensorCores both
      get work on the 'parallel' batch axis.
    - TB = round_up(cdiv(rows, nb), 8) keeps batch-pad overshoot < 8 rows/tile.
    """
    cap = max(8, min(tb_max, (vmem_budget // (2 * row_bytes)) // 8 * 8))
    b8 = _round_up(B, 8)
    nb = max(pl.cdiv(b8, cap), 2 if b8 >= 16 else 1)
    TB = _round_up(pl.cdiv(b8, nb), 8)
    nb = pl.cdiv(b8, TB)
    B_pad = nb * TB
    return TB, nb, B_pad


@functools.partial(jax.jit, static_argnames=("vertexes", "edges", "nodes"))
def generator_forward(x, prepped, *, vertexes, edges, nodes):
    """Pallas-backed forward pass of the MolGAN Generator.

    x: (B, z_dim) float32
    prepped: output of prepare_params()
    returns: (edges_logits (B, V, V, E), nodes_logits (B, V, N))
    """
    (w0, b0, w1, b1, we_f, be_f, wn, bn) = prepped
    B, z_dim = x.shape
    V, E, N = vertexes, edges, nodes
    evv = E * V * V
    vn = V * N

    # Per-row bytes moved per grid step (x in + both outputs out), f32.
    row_bytes = 4 * (z_dim + evv + vn)
    TB, nb, B_pad = _select_batch_tiling(B, row_bytes)
    if B_pad != B:
        x = jnp.pad(x, ((0, B_pad - B), (0, 0)))

    edges_slab, nodes_slab = pl.pallas_call(
        _generator_kernel,
        out_shape=(
            jax.ShapeDtypeStruct((B_pad, evv), jnp.float32),
            jax.ShapeDtypeStruct((B_pad, vn), jnp.float32),
        ),
        grid=(nb,),
        in_specs=[
            pl.BlockSpec((TB, z_dim), lambda i: (i, 0)),    # x: tiled on batch
            pl.BlockSpec(w0.shape, lambda i: (0, 0)),       # weights resident
            pl.BlockSpec(b0.shape, lambda i: (0, 0)),
            pl.BlockSpec(w1.shape, lambda i: (0, 0)),
            pl.BlockSpec(b1.shape, lambda i: (0, 0)),
            pl.BlockSpec(we_f.shape, lambda i: (0, 0)),
            pl.BlockSpec(be_f.shape, lambda i: (0, 0)),
            pl.BlockSpec(wn.shape, lambda i: (0, 0)),
            pl.BlockSpec(bn.shape, lambda i: (0, 0)),
        ],
        out_specs=[
            pl.BlockSpec((TB, evv), lambda i: (i, 0)),      # edges slab
            pl.BlockSpec((TB, vn), lambda i: (i, 0)),       # nodes slab
        ],
        compiler_params=pltpu.CompilerParams(
            dimension_semantics=("parallel",)               # v7x: 2 TCs shard batch
        ),
    )(x, w0, b0, w1, b1, we_f, be_f, wn, bn)

    # Wrapper glue: drop batch padding (row slice, contiguous) and reshape.
    edges_logits = edges_slab[:B].reshape(B, V, V, E)
    nodes_logits = nodes_slab[:B].reshape(B, V, N)
    return edges_logits, nodes_logits


def init_params(key, z_dim, conv_dims, vertexes, edges, nodes):
    """Deterministic synthetic parameters (stored as (in, out); a real
    PyTorch checkpoint's (out, in) Linear weights must be transposed)."""
    keys = jax.random.split(key, 8)
    c0, c1 = conv_dims
    w0 = jax.random.normal(keys[0], (z_dim, c0), jnp.float32) * 0.1
    b0 = jax.random.normal(keys[1], (1, c0), jnp.float32) * 0.1
    w1 = jax.random.normal(keys[2], (c0, c1), jnp.float32) * 0.1
    b1 = jax.random.normal(keys[3], (1, c1), jnp.float32) * 0.1
    we = jax.random.normal(keys[4], (c1, edges * vertexes * vertexes), jnp.float32) * 0.1
    be = jax.random.normal(keys[5], (1, edges * vertexes * vertexes), jnp.float32) * 0.1
    wn = jax.random.normal(keys[6], (c1, vertexes * nodes), jnp.float32) * 0.1
    bn = jax.random.normal(keys[7], (1, vertexes * nodes), jnp.float32) * 0.1
    return (w0, b0, w1, b1, we, be, wn, bn)


def reference_forward(x, params, *, vertexes, edges, nodes):
    """Pure-JAX reference (mirrors the PyTorch forward, eval mode)."""
    (w0, b0, w1, b1, we, be, wn, bn) = params
    h = jnp.tanh(x @ w0 + b0)
    h = jnp.tanh(h @ w1 + b1)
    B = x.shape[0]
    e = (h @ we + be).reshape(B, edges, vertexes, vertexes)
    e = (e + jnp.transpose(e, (0, 1, 3, 2))) / 2.0
    edges_logits = jnp.transpose(e, (0, 2, 3, 1))
    nodes_logits = (h @ wn + bn).reshape(B, vertexes, nodes)
    return edges_logits, nodes_logits


if __name__ == "__main__":
    # Small, MolGAN-like configuration.
    B = 2
    z_dim = 8
    conv_dims = [32, 64]
    vertexes = 9
    edges = 5
    nodes = 5

    key = jax.random.PRNGKey(0)
    k_x, k_p = jax.random.split(key)
    x = jax.random.normal(k_x, (B, z_dim), jnp.float32)
    params = init_params(k_p, z_dim, conv_dims, vertexes, edges, nodes)

    # One-time weight prep (fold symmetrize/permute into edges-head columns).
    prepped = prepare_params(params, vertexes=vertexes, edges=edges, nodes=nodes)
    prepped = jax.tree_util.tree_map(jax.block_until_ready, prepped)

    edges_logits, nodes_logits = generator_forward(
        x, prepped, vertexes=vertexes, edges=edges, nodes=nodes
    )
    jax.block_until_ready(edges_logits)
    jax.block_until_ready(nodes_logits)

    # Sanity check against pure-JAX reference.
    ref_e, ref_n = reference_forward(
        x, params, vertexes=vertexes, edges=edges, nodes=nodes
    )
    assert edges_logits.shape == (B, vertexes, vertexes, edges)
    assert nodes_logits.shape == (B, vertexes, nodes)
    assert jnp.allclose(edges_logits, ref_e, atol=2e-5, rtol=2e-5)
    assert jnp.allclose(nodes_logits, ref_n, atol=2e-5, rtol=2e-5)

    print("KERNEL_OK")
</pallas_src>

<mosaic_0001>
module attributes {stable_mosaic.version = 11 : i64} {
  func.func @_generator_kernel(%arg0: i32, %arg1: memref<8x8xf32, #tpu.memory_space<vmem>>, %arg2: memref<8x32xf32, #tpu.memory_space<vmem>>, %arg3: memref<1x32xf32, #tpu.memory_space<vmem>>, %arg4: memref<32x64xf32, #tpu.memory_space<vmem>>, %arg5: memref<1x64xf32, #tpu.memory_space<vmem>>, %arg6: memref<64x405xf32, #tpu.memory_space<vmem>>, %arg7: memref<1x405xf32, #tpu.memory_space<vmem>>, %arg8: memref<64x45xf32, #tpu.memory_space<vmem>>, %arg9: memref<1x45xf32, #tpu.memory_space<vmem>>, %arg10: memref<8x405xf32, #tpu.memory_space<vmem>>, %arg11: memref<8x45xf32, #tpu.memory_space<vmem>>) attributes {dimension_semantics = [#tpu.dimension_semantics<parallel>], iteration_bounds = array<i64: 1>, scalar_prefetch = 0 : i64, scratch_operands = 0 : i64, tpu.core_type = #tpu.core_type<tc>, window_params = [{transform_indices = @transform_0, window_bounds = array<i64: 8, 8>}, {pipeline_mode = #tpu.pipeline_mode<synchronous>, transform_indices = @transform_1, window_bounds = array<i64: 8, 32>}, {pipeline_mode = #tpu.pipeline_mode<synchronous>, transform_indices = @transform_2, window_bounds = array<i64: 1, 32>}, {pipeline_mode = #tpu.pipeline_mode<synchronous>, transform_indices = @transform_3, window_bounds = array<i64: 32, 64>}, {pipeline_mode = #tpu.pipeline_mode<synchronous>, transform_indices = @transform_4, window_bounds = array<i64: 1, 64>}, {pipeline_mode = #tpu.pipeline_mode<synchronous>, transform_indices = @transform_5, window_bounds = array<i64: 64, 405>}, {pipeline_mode = #tpu.pipeline_mode<synchronous>, transform_indices = @transform_6, window_bounds = array<i64: 1, 405>}, {pipeline_mode = #tpu.pipeline_mode<synchronous>, transform_indices = @transform_7, window_bounds = array<i64: 64, 45>}, {pipeline_mode = #tpu.pipeline_mode<synchronous>, transform_indices = @transform_8, window_bounds = array<i64: 1, 45>}, {transform_indices = @transform_9, window_bounds = array<i64: 8, 405>}, {transform_indices = @transform_10, window_bounds = array<i64: 8, 45>}]} {
    %c0 = arith.constant 0 : index
    %c0_0 = arith.constant 0 : index
    %0 = vector.load %arg1[%c0, %c0_0] : memref<8x8xf32, #tpu.memory_space<vmem>>, vector<8x8xf32>
    %c0_1 = arith.constant 0 : index
    %c0_2 = arith.constant 0 : index
    %1 = vector.load %arg2[%c0_1, %c0_2] : memref<8x32xf32, #tpu.memory_space<vmem>>, vector<8x32xf32>
    %cst = arith.constant dense<0.000000e+00> : vector<8x32xf32>
    %2 = tpu.matmul %0, %1, %cst {dimension_numbers = #tpu.dot_dimension_numbers<[1], [0], [0], [1], [0, 0, 1, 1], [], []>} : vector<8x8xf32>, vector<8x32xf32>, vector<8x32xf32> -> vector<8x32xf32>
    %c0_3 = arith.constant 0 : index
    %c0_4 = arith.constant 0 : index
    %3 = vector.load %arg3[%c0_3, %c0_4] : memref<1x32xf32, #tpu.memory_space<vmem>>, vector<1x32xf32>
    %4 = vector.broadcast %3 : vector<1x32xf32> to vector<8x32xf32>
    %5 = arith.addf %2, %4 : vector<8x32xf32>
    %6 = math.tanh %5 : vector<8x32xf32>
    %c0_5 = arith.constant 0 : index
    %c0_6 = arith.constant 0 : index
    %7 = vector.load %arg4[%c0_5, %c0_6] : memref<32x64xf32, #tpu.memory_space<vmem>>, vector<32x64xf32>
    %cst_7 = arith.constant dense<0.000000e+00> : vector<8x64xf32>
    %8 = tpu.matmul %6, %7, %cst_7 {dimension_numbers = #tpu.dot_dimension_numbers<[1], [0], [0], [1], [0, 0, 1, 1], [], []>} : vector<8x32xf32>, vector<32x64xf32>, vector<8x64xf32> -> vector<8x64xf32>
    %c0_8 = arith.constant 0 : index
    %c0_9 = arith.constant 0 : index
    %9 = vector.load %arg5[%c0_8, %c0_9] : memref<1x64xf32, #tpu.memory_space<vmem>>, vector<1x64xf32>
    %10 = vector.broadcast %9 : vector<1x64xf32> to vector<8x64xf32>
    %11 = arith.addf %8, %10 : vector<8x64xf32>
    %12 = math.tanh %11 : vector<8x64xf32>
    %c0_10 = arith.constant 0 : index
    %c0_11 = arith.constant 0 : index
    %13 = vector.load %arg6[%c0_10, %c0_11] : memref<64x405xf32, #tpu.memory_space<vmem>>, vector<64x405xf32>
    %cst_12 = arith.constant dense<0.000000e+00> : vector<8x405xf32>
    %14 = tpu.matmul %12, %13, %cst_12 {dimension_numbers = #tpu.dot_dimension_numbers<[1], [0], [0], [1], [0, 0, 1, 1], [], []>} : vector<8x64xf32>, vector<64x405xf32>, vector<8x405xf32> -> vector<8x405xf32>
    %c0_13 = arith.constant 0 : index
    %c0_14 = arith.constant 0 : index
    %15 = vector.load %arg7[%c0_13, %c0_14] : memref<1x405xf32, #tpu.memory_space<vmem>>, vector<1x405xf32>
    %16 = vector.broadcast %15 : vector<1x405xf32> to vector<8x405xf32>
    %17 = arith.addf %14, %16 : vector<8x405xf32>
    %c0_15 = arith.constant 0 : index
    %c0_16 = arith.constant 0 : index
    %18 = vector.load %arg10[%c0_15, %c0_16] : memref<8x405xf32, #tpu.memory_space<vmem>>, vector<8x405xf32>
    tpu.vector_store %arg10[%c0_15, %c0_16], %17 {strides = array<i32>} : memref<8x405xf32, #tpu.memory_space<vmem>>, vector<8x405xf32>,
    %c0_17 = arith.constant 0 : index
    %c0_18 = arith.constant 0 : index
    %19 = vector.load %arg8[%c0_17, %c0_18] : memref<64x45xf32, #tpu.memory_space<vmem>>, vector<64x45xf32>
    %cst_19 = arith.constant dense<0.000000e+00> : vector<8x45xf32>
    %20 = tpu.matmul %12, %19, %cst_19 {dimension_numbers = #tpu.dot_dimension_numbers<[1], [0], [0], [1], [0, 0, 1, 1], [], []>} : vector<8x64xf32>, vector<64x45xf32>, vector<8x45xf32> -> vector<8x45xf32>
    %c0_20 = arith.constant 0 : index
    %c0_21 = arith.constant 0 : index
    %21 = vector.load %arg9[%c0_20, %c0_21] : memref<1x45xf32, #tpu.memory_space<vmem>>, vector<1x45xf32>
    %22 = vector.broadcast %21 : vector<1x45xf32> to vector<8x45xf32>
    %23 = arith.addf %20, %22 : vector<8x45xf32>
    %c0_22 = arith.constant 0 : index
    %c0_23 = arith.constant 0 : index
    %24 = vector.load %arg11[%c0_22, %c0_23] : memref<8x45xf32, #tpu.memory_space<vmem>>, vector<8x45xf32>
    tpu.vector_store %arg11[%c0_22, %c0_23], %23 {strides = array<i32>} : memref<8x45xf32, #tpu.memory_space<vmem>>, vector<8x45xf32>,
    return
  }
  func.func @transform_0(%arg0: i32) -> (i32, i32) {
    %c0_i32 = arith.constant 0 : i32
    %c0_i32_0 = arith.constant 0 : i32
    return %arg0, %c0_i32 : i32, i32
  }
  func.func @transform_1(%arg0: i32) -> (i32, i32) {
    %c0_i32 = arith.constant 0 : i32
    %c0_i32_0 = arith.constant 0 : i32
    %c0_i32_1 = arith.constant 0 : i32
    return %c0_i32, %c0_i32_0 : i32, i32
  }
  func.func @transform_2(%arg0: i32) -> (i32, i32) {
    %c0_i32 = arith.constant 0 : i32
    %c0_i32_0 = arith.constant 0 : i32
    %c0_i32_1 = arith.constant 0 : i32
    return %c0_i32, %c0_i32_0 : i32, i32
  }
  func.func @transform_3(%arg0: i32) -> (i32, i32) {
    %c0_i32 = arith.constant 0 : i32
    %c0_i32_0 = arith.constant 0 : i32
    %c0_i32_1 = arith.constant 0 : i32
    return %c0_i32, %c0_i32_0 : i32, i32
  }
  func.func @transform_4(%arg0: i32) -> (i32, i32) {
    %c0_i32 = arith.constant 0 : i32
    %c0_i32_0 = arith.constant 0 : i32
    %c0_i32_1 = arith.constant 0 : i32
    return %c0_i32, %c0_i32_0 : i32, i32
  }
  func.func @transform_5(%arg0: i32) -> (i32, i32) {
    %c0_i32 = arith.constant 0 : i32
    %c0_i32_0 = arith.constant 0 : i32
    %c0_i32_1 = arith.constant 0 : i32
    return %c0_i32, %c0_i32_0 : i32, i32
  }
  func.func @transform_6(%arg0: i32) -> (i32, i32) {
    %c0_i32 = arith.constant 0 : i32
    %c0_i32_0 = arith.constant 0 : i32
    %c0_i32_1 = arith.constant 0 : i32
    return %c0_i32, %c0_i32_0 : i32, i32
  }
  func.func @transform_7(%arg0: i32) -> (i32, i32) {
    %c0_i32 = arith.constant 0 : i32
    %c0_i32_0 = arith.constant 0 : i32
    %c0_i32_1 = arith.constant 0 : i32
    return %c0_i32, %c0_i32_0 : i32, i32
  }
  func.func @transform_8(%arg0: i32) -> (i32, i32) {
    %c0_i32 = arith.constant 0 : i32
    %c0_i32_0 = arith.constant 0 : i32
    %c0_i32_1 = arith.constant 0 : i32
    return %c0_i32, %c0_i32_0 : i32, i32
  }
  func.func @transform_9(%arg0: i32) -> (i32, i32) {
    %c0_i32 = arith.constant 0 : i32
    %c0_i32_0 = arith.constant 0 : i32
    return %arg0, %c0_i32 : i32, i32
  }
  func.func @transform_10(%arg0: i32) -> (i32, i32) {
    %c0_i32 = arith.constant 0 : i32
    %c0_i32_0 = arith.constant 0 : i32
    return %arg0, %c0_i32 : i32, i32
  }
}

</mosaic_0001>

<bundles_post_ra>
// kernel: generator_forward.1
= control target key start
LH: loop header
LB: loop body
LE: loop exit
PB: predicated region body
PF: predicated region fallthrough
CT: control target
= control target key end

     0   :  { %16 = vsyncpa [#allocation3], 0  ;;  %s331_s16 = smov [#allocation2]   ;;  %s332_s18 = smov 512   ;;  %s461_s0 = inlined_call_operand.vmem [shape: f32[8,8], index: 0, kind: input, shape index: {}]   ;;  %s462_s1 = inlined_call_operand.vmem [shape: f32[8,32], index: 1, kind: input, shape index: {}]   ;;  %s463_s2 = inlined_call_operand.vmem [shape: f32[1,32], index: 2, kind: input, shape index: {}]   ;;  %s464_s3 = inlined_call_operand.vmem [shape: f32[32,64], index: 3, kind: input, shape index: {}]   ;;  %s465_s4 = inlined_call_operand.vmem [shape: f32[1,64], index: 4, kind: input, shape index: {}]   ;;  %s466_s5 = inlined_call_operand.hbm [shape: f32[64,405], index: 5, kind: input, shape index: {}]   ;;  %s467_s6 = inlined_call_operand.vmem [shape: f32[1,405], index: 6, kind: input, shape index: {}]   ;;  %s468_s7 = inlined_call_operand.vmem [shape: f32[64,45], index: 7, kind: input, shape index: {}]   ;;  %s469_s8 = inlined_call_operand.vmem [shape: f32[1,45], index: 8, kind: input, shape index: {}]   ;;  %s470_s9 = inlined_call_operand.vmem [shape: f32[8,405], index: 9, kind: output, shape index: {0}]   ;;  %s471_s10 = inlined_call_operand.vmem [shape: f32[8,45], index: 10, kind: output, shape index: {1}]  }
   0x1   :  { %s31_s15 = sshll.u32 %s466_s5, 4  ;;  %s33_s17 = sshll.u32 %s331_s16, 4  ;;  %s32_s15 = int_to_ptr.hbm [resolvable:$true] %s31_s15  ;;  %s34_s17 = int_to_ptr.vmem [resolvable:$true] %s33_s17 }
   0x2   :  { %s333_s19 = smov 32  }
   0x3   :  { %39 = dma.hbm_to_vmem [thread:$0]  %s32_s15, 4096, %s34_s17, [#allocation3], %s332_s18, %s332_s18, %s333_s19  }
   0x4   :  { %329 = dma.done.wait [#allocation3], 4096  }
   0x5   :  { %330 = vsyncadd [#allocation3], 4294963200  ;;  %vm56_vm0 = vcmask 64512   ;;  %v51_v0 = vld [vmem:[%s462_s1] sm:$0xff]  ;;  %v84_v2 = vld [vmem:[%s464_s3 + $0x18] sm:$0xff]  ;;  %vm89_vm1 = vcmask 261120  }
   0x6   :  { %v50_v1 = vld [vmem:[%s461_s0] sm:$0xff]  ;;  %75 = vmatpush.msra.mxu0 %v51_v0  ;;  %105 = vmatpush.msra.mxu1 %v84_v2  ;;  %v83_v3 = vld [vmem:[%s464_s3 + $0x10] sm:$0xff]  ;;  %v82_v4 = vld [vmem:[%s464_s3 + $0x8] sm:$0xff]  ;;  %vm156_vm2 = vcmask 523264   ;;  %vm243_vm3 = vcmask 171008   ;;  %vm277_vm4 = vcmask 367616  }
   0x7   :  { %288 = vmatmul.msk.f32.vlgmr.msra.gmra.mxu0 %vm56_vm0, %v50_v1  ;;  %v81_v5 = vld [vmem:[%s464_s3] sm:$0xff]  ;;  %v143_v8 = vld [vmem:[#allocation2 + $0xe8] sm:$0xff]  ;;  %v144_v9 = vld [vmem:[#allocation2 + $0xf0] sm:$0xff] }
   0x8   :  { %106 = vmatpush.msra.mxu1 %v83_v3  ;;  %v142_v6 = vld [vmem:[#allocation2 + $0xe0] sm:$0xff]  ;;  %188 = vmatpush.msra.mxu3 %v143_v8  ;;  %v145_v11 = vld [vmem:[#allocation2 + $0xf8] sm:$0xff]  ;;  %v139_v12 = vld [vmem:[#allocation2 + $0xc8] sm:$0xff] }
   0x9   :  { %v138_v7 = vld [vmem:[#allocation2 + $0xc0] sm:$0xff]  ;;  %168 = vmatpush.msra.mxu2 %v142_v6  ;;  %208 = vmatpush.msrb.mxu0 %v144_v9  ;;  %v140_v14 = vld [vmem:[#allocation2 + $0xd0] sm:$0xff]  ;;  %v141_v15 = vld [vmem:[#allocation2 + $0xd8] sm:$0xff] }
   0xa   :  { %107 = vmatpush.msra.mxu1 %v82_v4  ;;  %v134_v10 = vld [vmem:[#allocation2 + $0xa0] sm:$0xff]  ;;  %189 = vmatpush.msra.mxu3 %v139_v12  ;;  %v135_v16 = vld [vmem:[#allocation2 + $0xa8] sm:$0xff]  ;;  %v136_v17 = vld [vmem:[#allocation2 + $0xb0] sm:$0xff] }
   0xb   :  { %169 = vmatpush.msra.mxu2 %v138_v7  ;;  %v130_v13 = vld [vmem:[#allocation2 + $0x80] sm:$0xff]  ;;  %209 = vmatpush.msrb.mxu0 %v140_v14  ;;  %v137_v18 = vld [vmem:[#allocation2 + $0xb8] sm:$0xff]  ;;  %v131_v26 = vld [vmem:[#allocation2 + $0x88] sm:$0xff] }
   0xc   :  { %108 = vmatpush.msra.mxu1 %v81_v5  ;;  %v126_v19 = vld [vmem:[#allocation2 + $0x60] sm:$0xff]  ;;  %190 = vmatpush.msra.mxu3 %v135_v16  ;;  %v132_v27 = vld [vmem:[#allocation2 + $0x90] sm:$0xff]  ;;  %v133_v28 = vld [vmem:[#allocation2 + $0x98] sm:$0xff] }
   0xd   :  { %170 = vmatpush.msra.mxu2 %v134_v10  ;;  %210 = vmatpush.msrb.mxu0 %v136_v17  ;;  %v122_v20 = vld [vmem:[#allocation2 + $0x40] sm:$0xff]  ;;  %v127_v30 = vld [vmem:[#allocation2 + $0x68] sm:$0xff]  ;;  %v128_v31 = vld [vmem:[#allocation2 + $0x70] sm:$0xff] }
   0xe   :  { %228 = vmatpush.msrb.mxu1 %v145_v11  ;;  %v298_v21 = vld [vmem:[%s463_s2] ss:$0 sm:$0xff]  ;;  %191 = vmatpush.msra.mxu3 %v131_v26  ;;  %v129_v32 = vld [vmem:[#allocation2 + $0x78] sm:$0xff]  ;;  %v123_v34 = vld [vmem:[#allocation2 + $0x48] sm:$0xff] }
   0xf   :  { %171 = vmatpush.msra.mxu2 %v130_v13  ;;  %v118_v25 = vld [vmem:[#allocation2 + $0x20] sm:$0xff]  ;;  %211 = vmatpush.msrb.mxu0 %v132_v27  ;;  %v252_v33 = vld [vmem:[%s468_s7 + $0x38] sm:$0xff]  ;;  %v124_v35 = vld [vmem:[#allocation2 + $0x50] sm:$0xff] }
  0x10   :  { %229 = vmatpush.msrb.mxu1 %v141_v15  ;;  %v114_v29 = vld [vmem:[#allocation2] sm:$0xff]  ;;  %192 = vmatpush.msra.mxu3 %v127_v30  ;;  %v125_v36 = vld [vmem:[#allocation2 + $0x58] sm:$0xff]  ;;  %v251_v37 = vld [vmem:[%s468_s7 + $0x30] sm:$0xff] }
  0x11   :  { %172 = vmatpush.msra.mxu2 %v126_v19  ;;  %212 = vmatpush.msrb.mxu0 %v128_v31  ;;  %v119_v38 = vld [vmem:[#allocation2 + $0x28] sm:$0xff]  ;;  %v120_v39 = vld [vmem:[#allocation2 + $0x30] sm:$0xff]  ;;  %v121_v40 = vld [vmem:[#allocation2 + $0x38] sm:$0xff] }
  0x12   :  { %230 = vmatpush.msrb.mxu1 %v137_v18  ;;  %193 = vmatpush.msra.mxu3 %v123_v34  ;;  %v250_v41 = vld [vmem:[%s468_s7 + $0x28] sm:$0xff]  ;;  %v116_v43 = vld [vmem:[#allocation2 + $0x10] sm:$0xff]  ;;  %v117_v44 = vld [vmem:[#allocation2 + $0x18] sm:$0xff] }
  0x13   :  { %173 = vmatpush.msra.mxu2 %v122_v20  ;;  %213 = vmatpush.msrb.mxu0 %v124_v35  ;;  %v115_v42 = vld [vmem:[#allocation2 + $0x8] sm:$0xff]  ;;  %v249_v45 = vld [vmem:[%s468_s7 + $0x20] sm:$0xff]  ;;  %v248_v46 = vld [vmem:[%s468_s7 + $0x18] sm:$0xff] }
  0x14   :  { %231 = vmatpush.msrb.mxu1 %v133_v28  ;;  %194 = vmatpush.msra.mxu3 %v119_v38  ;;  %v247_v47 = vld [vmem:[%s468_s7 + $0x10] sm:$0xff]  ;;  %v246_v48 = vld [vmem:[%s468_s7 + $0x8] sm:$0xff]  ;;  %v245_v49 = vld [vmem:[%s468_s7] sm:$0xff] }
  0x15   :  { %174 = vmatpush.msra.mxu2 %v118_v25  ;;  %214 = vmatpush.msrb.mxu0 %v120_v39  ;;  %v299_v50 = vld [vmem:[%s465_s4] ss:$0 sm:$0xff] }
  0x16   :  { %232 = vmatpush.msrb.mxu1 %v129_v32  ;;  %195 = vmatpush.msra.mxu3 %v115_v42  ;;  %v146_v54 = vld [vmem:[%s467_s6] sm:$0xf] }
  0x17   :  { %175 = vmatpush.msra.mxu2 %v114_v29  ;;  %215 = vmatpush.msrb.mxu0 %v116_v43  ;;  %v150_v55 = vperm.slane %v146_v54, 2  ;;  %v151_v56 = vperm.slane %v146_v54, 3  ;;  %v148_v61 = vperm.slane %v146_v54, 0  ;;  %v149_v62 = vperm.slane %v146_v54, 1  ;;  %v300_v3 = vld [vmem:[%s469_s8] ss:$0 sm:$0xff] }
  0x18   :  { %233 = vmatpush.msrb.mxu1 %v125_v36 }
  0x19   :  { %265 = vmatpush.msrb.mxu2 %v252_v33 }
  0x1a   :  { %234 = vmatpush.msrb.mxu1 %v121_v40 }
  0x1b   :  { %266 = vmatpush.msrb.mxu2 %v251_v37 }
  0x1c   :  { %235 = vmatpush.msrb.mxu1 %v117_v44 }
  0x1d   :  { %267 = vmatpush.msrb.mxu2 %v250_v41 }
  0x1f   :  { %268 = vmatpush.msrb.mxu2 %v249_v45 }
  0x21   :  { %269 = vmatpush.msrb.mxu2 %v248_v46 }
  0x23   :  { %270 = vmatpush.msrb.mxu2 %v247_v47 }
  0x25   :  { %271 = vmatpush.msrb.mxu2 %v246_v48 }
  0x27   :  { %272 = vmatpush.msrb.mxu2 %v245_v49 }
  0x84   :  { %v77_v22 = vpop.f32.mrf.mxu0 }
  0x85   :  { %v78_v23 = vadd.f32 %v298_v21, %v77_v22 }
  0x87   :  { %301 = vtanh.f32 %v78_v23 }
  0x8d   :  { %v302_v24 = vpop.eup %301 }
  0x8e   :  { %289 = vmatmul.msk.f32.vlgmr.msra.gmra.mxu1 %vm89_vm1, %v302_v24 }
 0x10b   :  { %v110_v51 = vpop.f32.mrf.mxu1 }
 0x10c   :  { %v111_v52 = vadd.f32 %v299_v50, %v110_v51 }
 0x10e   :  { %303 = vtanh.f32 %v111_v52 }
 0x114   :  { %v304_v53 = vpop.eup %303 }
 0x115   :  { %290 = vmatmul.msk.f32.vlgmr.msra.gmra.mxu2 %vm156_vm2, %v304_v53  ;;  %291 = vmatmul.msk.f32.vlgmr.msra.gmra.mxu3 %vm156_vm2, %v304_v53 }
 0x116   :  { %292 = vmatmul.msk.f32.vlgmr.msrb.gmra.mxu0 %vm156_vm2, %v304_v53  ;;  %293 = vmatmul.msk.f32.vlgmr.msrb.gmra.mxu1 %vm156_vm2, %v304_v53 }
 0x11d   :  { %294 = vmatmul.msk.f32.vlgmr.msrb.gmra.mxu2 %vm156_vm2, %v304_v53 }
 0x193   :  { %v217_v57 = vpop.f32.mrf.mxu0  ;;  %v237_v58 = vpop.f32.mrf.mxu1 }
 0x194   :  { %v218_v59 = vadd.f32 %v217_v57, %v150_v55  ;;  %v238_v60 = vadd.f32 %v237_v58, %v151_v56 }
 0x196   :  { %242 = vst [vmem:[%s470_s9 + $0x10] sm:$0xff] %v218_v59 }
 0x197   :  { %244 = vst.msk [vmem:[%s470_s9 + $0x18] sm:$0xff] %vm243_vm3, %v238_v60 }
 0x198   :  { %v177_v63 = vpop.f32.mrf.mxu2  ;;  %v197_v0 = vpop.f32.mrf.mxu3 }
 0x199   :  { %v178_v1 = vadd.f32 %v177_v63, %v148_v61  ;;  %v198_v2 = vadd.f32 %v197_v0, %v149_v62 }
 0x19b   :  { %240 = vst [vmem:[%s470_s9] sm:$0xff] %v178_v1 }
 0x19c   :  { %241 = vst [vmem:[%s470_s9 + $0x8] sm:$0xff] %v198_v2 }
 0x1a0   :  { %v274_v4 = vpop.f32.mrf.mxu2 }
 0x1a1   :  { %v275_v5 = vadd.f32 %v300_v3, %v274_v4 }
 0x1a3   :  { %278 = vst.msk [vmem:[%s471_s10] sm:$0xff] %vm277_vm4, %v275_v5 }
 0x1a4   :  { %287 = vsyncpa [#allocation3], 1 }

</bundles_post_ra>
